<compile_context>
chip_gen: v6e
topology: v6e:2x2x1
jax: 0.10.0
libtpu: 0.0.40
codegen_flags: <defaults>
</compile_context>

<pallas_src>
import jax
import jax.numpy as jnp
from jax import lax
from jax.experimental import pallas as pl
from jax.experimental.pallas import tpu as pltpu

_EPS = 1e-12                      # F.normalize default eps
_EPS_SQ = _EPS * _EPS
_TARGET_BLOCK_BYTES = 4 << 20     # ~4 MiB padded input block
_VMEM_LIMIT_BYTES = 32 * 1024 * 1024


def _round_up(x, m):
    return -(-x // m) * m


def _sublane_multiple(itemsize):
    # 8 sublanes/vreg for 32-bit, 16 for 16-bit, 32 for 8-bit (packed along sublanes)
    return max(8, 32 // max(1, itemsize))


# ----------------------------------------------------------------------------
# Kernels
# ----------------------------------------------------------------------------
def _channel_norm_kernel(x_ref, w_ref, b_ref, o_ref):
    """Normalize over the channel (sublane) axis.

    x_ref: (tile_b, C, tile_l)   w_ref/b_ref: (1, C, 1) float32   o_ref: same as x_ref.
    """
    x = x_ref[...].astype(jnp.float32)                   # (tile_b, C, tile_l)
    sq = jnp.sum(x * x, axis=1, keepdims=True)           # (tile_b, 1, tile_l)
    inv = lax.rsqrt(jnp.maximum(sq, _EPS_SQ))            # == 1 / max(||x||_2, eps)
    y = x * inv
    o_ref[...] = (w_ref[...] * y + b_ref[...]).astype(o_ref.dtype)


def _row_norm_kernel(x_ref, w_ref, b_ref, o_ref):
    """Normalize over the hidden (lane) axis.

    x_ref: (tile_n, hidden)   w_ref/b_ref: (1, hidden) float32.
    """
    x = x_ref[...].astype(jnp.float32)                   # (tile_n, hidden)
    sq = jnp.sum(x * x, axis=-1, keepdims=True)          # (tile_n, 1)
    inv = lax.rsqrt(jnp.maximum(sq, _EPS_SQ))
    y = x * inv
    o_ref[...] = (w_ref[...] * y + b_ref[...]).astype(o_ref.dtype)


# ----------------------------------------------------------------------------
# Tile selection (padding-aware VMEM accounting)
# ----------------------------------------------------------------------------
def _pick_channel_tiles(bsz, c, L, itemsize):
    """(tile_b, tile_l) for the (B, C, L) layout: lane tile multiple of 128 (or == L),
    batch rows folded so the PADDED block stays ~_TARGET_BLOCK_BYTES."""
    sub = _sublane_multiple(itemsize)
    c_pad = _round_up(c, sub)
    per_lane_bytes = max(1, c_pad * itemsize)
    max_lanes = max(128, (_TARGET_BLOCK_BYTES // per_lane_bytes) // 128 * 128)

    if L <= max_lanes:
        tile_l = L
        row_bytes = c_pad * _round_up(L, 128) * itemsize
        tile_b = max(1, min(bsz, _TARGET_BLOCK_BYTES // row_bytes))
    else:
        tile_l = max_lanes
        tile_b = 1

    # Keep >= 2 programs when possible so both v7x TensorCores get fed.
    if pl.cdiv(bsz, tile_b) * pl.cdiv(L, tile_l) == 1:
        if bsz >= 2:
            tile_b = -(-bsz // 2)
        elif L >= 256:
            tile_l = _round_up(-(-L // 2), 128)
    return tile_b, tile_l


def _pick_row_tiles(n, hidden, itemsize):
    """Sublane tile for the (N, hidden) layout: multiple of the dtype's packed
    sublane multiple, padded block ~_TARGET_BLOCK_BYTES."""
    sub = _sublane_multiple(itemsize)
    per_row = max(1, _round_up(hidden, 128) * itemsize)
    max_rows = max(sub, (_TARGET_BLOCK_BYTES // per_row) // sub * sub)
    tile_n = n if n <= max_rows else max_rows
    # Keep >= 2 programs when the array is big enough (v7x dual TC).
    if pl.cdiv(n, tile_n) == 1 and n >= 2 * sub:
        tile_n = _round_up(-(-n // 2), sub)
    return tile_n


# ----------------------------------------------------------------------------
# pallas_call wrappers
# ----------------------------------------------------------------------------
def _normalize_channels_first(x3, weight_f32, bias_f32):
    """x3: (B, C, L); L2-normalize over C for every (b, l); affine per channel."""
    bsz, c, L = x3.shape
    itemsize = jnp.dtype(x3.dtype).itemsize
    tile_b, tile_l = _pick_channel_tiles(bsz, c, L, itemsize)
    grid = (pl.cdiv(bsz, tile_b), pl.cdiv(L, tile_l))
    w3 = weight_f32.reshape(1, c, 1)
    b3 = bias_f32.reshape(1, c, 1)

    return pl.pallas_call(
        _channel_norm_kernel,
        out_shape=jax.ShapeDtypeStruct((bsz, c, L), x3.dtype),
        grid_spec=pltpu.PrefetchScalarGridSpec(
            num_scalar_prefetch=0,
            grid=grid,
            in_specs=[
                pl.BlockSpec((tile_b, c, tile_l), lambda bi, li: (bi, 0, li)),
                pl.BlockSpec((1, c, 1), lambda bi, li: (0, 0, 0)),
                pl.BlockSpec((1, c, 1), lambda bi, li: (0, 0, 0)),
            ],
            out_specs=pl.BlockSpec((tile_b, c, tile_l), lambda bi, li: (bi, 0, li)),
        ),
        compiler_params=pltpu.CompilerParams(
            dimension_semantics=("parallel", "parallel"),
            vmem_limit_bytes=_VMEM_LIMIT_BYTES,
        ),
    )(x3, w3, b3)


def _normalize_rows(x2, weight_f32, bias_f32):
    """x2: (N, hidden); L2-normalize each row along the last (lane) axis; affine."""
    n, hidden = x2.shape
    itemsize = jnp.dtype(x2.dtype).itemsize
    tile_n = _pick_row_tiles(n, hidden, itemsize)
    grid = (pl.cdiv(n, tile_n),)
    w2 = weight_f32.reshape(1, hidden)
    b2 = bias_f32.reshape(1, hidden)

    return pl.pallas_call(
        _row_norm_kernel,
        out_shape=jax.ShapeDtypeStruct((n, hidden), x2.dtype),
        grid_spec=pltpu.PrefetchScalarGridSpec(
            num_scalar_prefetch=0,
            grid=grid,
            in_specs=[
                pl.BlockSpec((tile_n, hidden), lambda i: (i, 0)),
                pl.BlockSpec((1, hidden), lambda i: (0, 0)),
                pl.BlockSpec((1, hidden), lambda i: (0, 0)),
            ],
            out_specs=pl.BlockSpec((tile_n, hidden), lambda i: (i, 0)),
        ),
        compiler_params=pltpu.CompilerParams(
            dimension_semantics=("parallel",),
            vmem_limit_bytes=_VMEM_LIMIT_BYTES,
        ),
    )(x2, w2, b2)


def elementwise_param_normalize(x, weight, bias):
    """JAX equivalent of ElementwiseParamNormalize.forward with mode 'param_mul_L2'."""
    hidden = weight.shape[0]
    w32 = weight.astype(jnp.float32)
    b32 = bias.astype(jnp.float32)

    if x.ndim == 4:
        b, c, h, w = x.shape
        assert hidden == c
        # (B, C, H, W) -> (B, C, H*W) is a free reshape; normalize over C (sublane).
        y = _normalize_channels_first(x.reshape(b, c, h * w), w32, b32)
        return y.reshape(b, c, h, w)
    elif x.ndim == 3:
        b, c, j = x.shape
        assert hidden == c
        return _normalize_channels_first(x, w32, b32)
    elif x.ndim == 6:
        b, c, i, j, k, l = x.shape
        assert hidden == c * k * l
        if hidden < 128:
            # Small hidden: put hidden on sublanes and tokens on lanes so the
            # kernel's loads/stores are lane-dense (unmasked vst).
            xr = jnp.transpose(x, (1, 4, 5, 0, 2, 3)).reshape(1, hidden, b * i * j)
            y = _normalize_channels_first(xr, w32, b32)
            y = y.reshape(c, k, l, b, i, j)
            return jnp.transpose(y, (3, 0, 4, 5, 1, 2))
        else:
            # Large hidden: lane-dense row normalization.
            xr = jnp.transpose(x, (0, 2, 3, 1, 4, 5)).reshape(b * i * j, hidden)
            y2 = _normalize_rows(xr, w32, b32)
            yr = y2.reshape(b, i, j, c, k, l)
            return jnp.transpose(yr, (0, 3, 1, 2, 4, 5))
    else:
        raise ValueError(f"unsupported ndim {x.ndim}")


# ----------------------------------------------------------------------------
# Pure-JAX reference (mirrors the PyTorch forward)
# ----------------------------------------------------------------------------
def _reference(x, weight, bias):
    if x.ndim == 4:
        xr = jnp.transpose(x, (0, 2, 3, 1))
    elif x.ndim == 3:
        xr = jnp.transpose(x, (0, 2, 1))
    else:
        b, c, i, j, k, l = x.shape
        xr = jnp.transpose(x, (0, 2, 3, 1, 4, 5)).reshape(b, i, j, c * k * l)
    norm = jnp.sqrt(jnp.sum(xr.astype(jnp.float32) ** 2, axis=-1, keepdims=True))
    y = weight * (xr / jnp.maximum(norm, _EPS)) + bias
    if x.ndim == 4:
        return jnp.transpose(y, (0, 3, 1, 2))
    elif x.ndim == 3:
        return jnp.transpose(y, (0, 2, 1))
    else:
        b, c, i, j, k, l = x.shape
        return jnp.transpose(y.reshape(b, i, j, c, k, l), (0, 3, 1, 2, 4, 5))


if __name__ == "__main__":
    key = jax.random.PRNGKey(0)
    kx, kw, kb, kx3, kx6, kw6, kb6, kx6b, kw6b, kb6b = jax.random.split(key, 10)

    # --- 4-D (NCHW) primary case: batch=2, channels=4, spatial=16x16 -> hidden = C = 4
    B, C, H, W = 2, 4, 16, 16
    x = jax.random.normal(kx, (B, C, H, W), dtype=jnp.float32)
    weight = jax.random.normal(kw, (C,), dtype=jnp.float32)
    bias = jax.random.normal(kb, (C,), dtype=jnp.float32)

    out = jax.block_until_ready(elementwise_param_normalize(x, weight, bias))
    ref = _reference(x, weight, bias)
    assert out.shape == (B, C, H, W)
    assert jnp.allclose(out, ref, atol=1e-5, rtol=1e-5), "4-D mismatch vs reference"

    # --- 3-D case: (B, C, J) = (2, 4, 8)
    x3 = jax.random.normal(kx3, (2, 4, 8), dtype=jnp.float32)
    out3 = jax.block_until_ready(elementwise_param_normalize(x3, weight, bias))
    ref3 = _reference(x3, weight, bias)
    assert jnp.allclose(out3, ref3, atol=1e-5, rtol=1e-5), "3-D mismatch vs reference"

    # --- 6-D case, small hidden: (b, c, i, j, k, l) = (2, 3, 4, 4, 2, 5) -> hidden = 30
    x6 = jax.random.normal(kx6, (2, 3, 4, 4, 2, 5), dtype=jnp.float32)
    hid6 = 3 * 2 * 5
    w6 = jax.random.normal(kw6, (hid6,), dtype=jnp.float32)
    b6 = jax.random.normal(kb6, (hid6,), dtype=jnp.float32)
    out6 = jax.block_until_ready(elementwise_param_normalize(x6, w6, b6))
    ref6 = _reference(x6, w6, b6)
    assert jnp.allclose(out6, ref6, atol=1e-5, rtol=1e-5), "6-D (small hidden) mismatch"

    # --- 6-D case, lane-sized hidden: (1, 8, 2, 2, 4, 4) -> hidden = 128 (row-norm path)
    x6b = jax.random.normal(kx6b, (1, 8, 2, 2, 4, 4), dtype=jnp.float32)
    hid6b = 8 * 4 * 4
    w6b = jax.random.normal(kw6b, (hid6b,), dtype=jnp.float32)
    b6b = jax.random.normal(kb6b, (hid6b,), dtype=jnp.float32)
    out6b = jax.block_until_ready(elementwise_param_normalize(x6b, w6b, b6b))
    ref6b = _reference(x6b, w6b, b6b)
    assert jnp.allclose(out6b, ref6b, atol=1e-5, rtol=1e-5), "6-D (large hidden) mismatch"

    print("KERNEL_OK")
</pallas_src>

<mosaic_0001>
module attributes {stable_mosaic.version = 11 : i64} {
  func.func @_channel_norm_kernel(%arg0: i32, %arg1: i32, %arg2: memref<1x4x256xf32, #tpu.memory_space<vmem>>, %arg3: memref<1x4x1xf32, #tpu.memory_space<vmem>>, %arg4: memref<1x4x1xf32, #tpu.memory_space<vmem>>, %arg5: memref<1x4x256xf32, #tpu.memory_space<vmem>>) attributes {dimension_semantics = [#tpu.dimension_semantics<parallel>, #tpu.dimension_semantics<parallel>], iteration_bounds = array<i64: 2, 1>, scalar_prefetch = 0 : i64, scratch_operands = 0 : i64, tpu.core_type = #tpu.core_type<tc>, window_params = [{transform_indices = @transform_0, window_bounds = array<i64: 1, 4, 256>}, {pipeline_mode = #tpu.pipeline_mode<synchronous>, transform_indices = @transform_1, window_bounds = array<i64: 1, 4, 1>}, {pipeline_mode = #tpu.pipeline_mode<synchronous>, transform_indices = @transform_2, window_bounds = array<i64: 1, 4, 1>}, {transform_indices = @transform_3, window_bounds = array<i64: 1, 4, 256>}]} {
    %c0 = arith.constant 0 : index
    %c0_0 = arith.constant 0 : index
    %c0_1 = arith.constant 0 : index
    %0 = vector.load %arg2[%c0, %c0_0, %c0_1] : memref<1x4x256xf32, #tpu.memory_space<vmem>>, vector<1x4x256xf32>
    %1 = arith.mulf %0, %0 : vector<1x4x256xf32>
    %cst = arith.constant dense<0.000000e+00> : vector<1x256xf32>
    %2 = vector.multi_reduction <add>, %1, %cst [1] : vector<1x4x256xf32> to vector<1x256xf32>
    %3 = vector.shape_cast %2 : vector<1x256xf32> to vector<1x1x256xf32>
    %cst_2 = arith.constant 1.000000e-24 : f32
    %4 = vector.broadcast %cst_2 : f32 to vector<1x1x256xf32>
    %5 = arith.maximumf %3, %4 : vector<1x1x256xf32>
    %6 = math.rsqrt %5 : vector<1x1x256xf32>
    %7 = vector.broadcast %6 : vector<1x1x256xf32> to vector<1x4x256xf32>
    %8 = arith.mulf %0, %7 : vector<1x4x256xf32>
    %c0_3 = arith.constant 0 : index
    %c0_4 = arith.constant 0 : index
    %c0_5 = arith.constant 0 : index
    %9 = vector.load %arg3[%c0_3, %c0_4, %c0_5] : memref<1x4x1xf32, #tpu.memory_space<vmem>>, vector<1x4x1xf32>
    %10 = vector.broadcast %9 : vector<1x4x1xf32> to vector<1x4x256xf32>
    %11 = arith.mulf %10, %8 : vector<1x4x256xf32>
    %c0_6 = arith.constant 0 : index
    %c0_7 = arith.constant 0 : index
    %c0_8 = arith.constant 0 : index
    %12 = vector.load %arg4[%c0_6, %c0_7, %c0_8] : memref<1x4x1xf32, #tpu.memory_space<vmem>>, vector<1x4x1xf32>
    %13 = vector.broadcast %12 : vector<1x4x1xf32> to vector<1x4x256xf32>
    %14 = arith.addf %11, %13 : vector<1x4x256xf32>
    %c0_9 = arith.constant 0 : index
    %c0_10 = arith.constant 0 : index
    %c0_11 = arith.constant 0 : index
    %15 = vector.load %arg5[%c0_9, %c0_10, %c0_11] : memref<1x4x256xf32, #tpu.memory_space<vmem>>, vector<1x4x256xf32>
    tpu.vector_store %arg5[%c0_9, %c0_10, %c0_11], %14 {strides = array<i32>} : memref<1x4x256xf32, #tpu.memory_space<vmem>>, vector<1x4x256xf32>,
    return
  }
  func.func @transform_0(%arg0: i32, %arg1: i32) -> (i32, i32, i32) {
    %c0_i32 = arith.constant 0 : i32
    %c0_i32_0 = arith.constant 0 : i32
    return %arg0, %c0_i32, %arg1 : i32, i32, i32
  }
  func.func @transform_1(%arg0: i32, %arg1: i32) -> (i32, i32, i32) {
    %c0_i32 = arith.constant 0 : i32
    %c0_i32_0 = arith.constant 0 : i32
    %c0_i32_1 = arith.constant 0 : i32
    %c0_i32_2 = arith.constant 0 : i32
    return %c0_i32, %c0_i32_0, %c0_i32_1 : i32, i32, i32
  }
  func.func @transform_2(%arg0: i32, %arg1: i32) -> (i32, i32, i32) {
    %c0_i32 = arith.constant 0 : i32
    %c0_i32_0 = arith.constant 0 : i32
    %c0_i32_1 = arith.constant 0 : i32
    %c0_i32_2 = arith.constant 0 : i32
    return %c0_i32, %c0_i32_0, %c0_i32_1 : i32, i32, i32
  }
  func.func @transform_3(%arg0: i32, %arg1: i32) -> (i32, i32, i32) {
    %c0_i32 = arith.constant 0 : i32
    %c0_i32_0 = arith.constant 0 : i32
    return %arg0, %c0_i32, %arg1 : i32, i32, i32
  }
}

</mosaic_0001>

<bundles_post_ra>
// kernel: tpu_custom_call.1
= control target key start
LH: loop header
LB: loop body
LE: loop exit
PB: predicated region body
PF: predicated region fallthrough
CT: control target
= control target key end

     0   :  { %8 = vsyncpa [#allocation3], 0  ;;  %s723_s0 = inlined_call_operand.hbm [shape: f32[2,4,256], index: 0, kind: input, shape index: {}]   ;;  %s724_s1 = inlined_call_operand.vmem [shape: f32[1,4,1], index: 1, kind: input, shape index: {}]   ;;  %s725_s2 = inlined_call_operand.vmem [shape: f32[1,4,1], index: 2, kind: input, shape index: {}]   ;;  %s726_s3 = inlined_call_operand.hbm [shape: f32[2,4,256], index: 3, kind: output, shape index: {}]  }
   0x1   :  { %10 = vsyncpa [#allocation3 + $0x1], 0 }
   0x2   :  { %11 = vsyncpa [#allocation4], 0 }
   0x3   :  { %13 = vsyncpa [#allocation4 + $0x1], 0  ;;  %s579_s12 = smov 0   ;;  %s581_s13 = smov 0  }
   0x4   :  { %s583_s14 = smov 0   ;;  %s585_s15 = smov 0  }
   0x5   :  { %s587_s16 = smov 0   ;;  %s589_s17 = smov 0  }
   0x6 LB: > { %s361_s18 = sadd.s32 4294967295, %s554_s17   ;;  %s362_s19 = sadd.s32 4294967294, %s554_s17   ;;  %s554_s17 = sphi %s589_s17, %s19_s17   ;;  %s550_s16 = sphi %s587_s16, %s738_s16   ;;  %s546_s15 = sphi %s585_s15, %s737_s15   ;;  %s542_s14 = sphi %s583_s14, %s736_s14   ;;  %s538_s13 = sphi %s581_s13, %s735_s13   ;;  %s534_s12 = sphi %s579_s12, %s734_s12  }
   0x7   : > { %s31_s20 = sadd.s32 1, %s550_s16  ;;  %s40_s21 = sadd.s32 1, %s542_s14 }
   0x8   : > { %p33_p0 = scmp.ge.s32.totalorder %s31_s20, 2  ;;  %p47_p1 = scmp.ne.s32.totalorder %s542_s14, %s538_s13 }
   0x9   : > { %p48_p2 = scmp.eq.s32.totalorder %s554_s17, 0  ;;  %p53_p3 = scmp.ne.s32.totalorder %s538_s13, %s534_s12 }
   0xa   : > { %s740_s20 = smov (%p33_p0, %s31_s20), 0  ;;  %p54_p5 = scmp.eq.s32.totalorder %s361_s18, 0 }
   0xb   : > { %p620_p4 = por %p48_p2, %p47_p1  ;;  %s35_s23 = ssub.s32 %s550_s16, %s740_s20 }
   0xc   : > { %p121_p6 = scmp.eq.s32.totalorder %s361_s18, 1  ;;  %p38_p7 = scmp.eq.s32.totalorder %s35_s23, 0 }
   0xd   : > { %p626_p8 = por %p54_p5, %p53_p3  ;;  %p127_p10 = scmp.eq.s32.totalorder %s362_s19, 1 }
   0xe   : > { %p630_p9 = por %p121_p6, %p47_p1  ;;  %p390_p13 = scmp.lt.s32.totalorder %s554_s17, 2 }
   0xf   : > { %s635_s26 = scalar_select %p38_p7, %s542_s14, %s40_s21  }
  0x10   : > { %p637_p11 = por %p127_p10, %p53_p3  ;;  %s153_s28 = sand.u32 1, %s542_s14  }
  0x11   : > { %s365_s29 = sshll.u32 %s153_s28, 3  ;;  %s376_s30 = sshll.u32 %s550_s16, 7 }
  0x12   : > { %s730_s27 = scalar_select %p637_p11, 1, 0 }
  0x13   : > { %s165_s6 = scalar_lea.hbm %s723_s0, %s376_s30  ;;  %s157_s7 = scalar_lea.vmem [#allocation2], %s365_s29 }
  0x14   : > { %s167_s8 = sshll.u32 %s157_s7, 4  ;;  %p650_p0 = pnand %p390_p13, %p620_p4  ;;  %s168_s8 = int_to_ptr.vmem [resolvable:$true] %s167_s8 }
  0x15   : > { %p368_p1 = scmp.ge.s32.totalorder %s554_s17, 1  ;;  %p172_p2 = scmp.lt.s32.totalorder %s554_s17, 3 }
  0x16   : > { %s154_s10 = scalar_lea.sflag [#allocation3], %s153_s28  ;;  %p448_p3 = pneg %p650_p0 }
  0x17   : > { %s459_s11 = scalar_lea.vmem %s168_s8, 128  ;;  %s556_s18 = smov [#allocation2]  }
  0x18   : > { %p460_p5 = scmp.ne.s32.totalorder %s168_s8, %s459_s11  ;;  %s464_s19 = sshll.u32 %s556_s18, 4  ;;  %s465_s19 = int_to_ptr.vmem [resolvable:$false] %s464_s19 }
  0x19   : > { %s466_s21 = scalar_lea.vmem %s465_s19, 256  ;;  %p467_p10 = scmp.lt.s32.totalorder %s168_s8, %s465_s19 }
  0x1a   : > { %p462_p6 = pnand %p460_p5, %p448_p3  ;;  %p468_p12 = scmp.lt.s32.totalorder %s466_s21, %s459_s11 }
  0x1c   : > { %p463_p7 = pneg %p462_p6  ;;  %p469_p4 = por %p468_p12, %p467_p10 }
  0x1e   : > { %p470_p13 = pnand %p469_p4, %p463_p7 }
  0x20   : > { %473 = shalt.err (!%p470_p13)
}
  0x21   : > { %385 = dma.hbm_to_vmem [thread:$0]  (!%p650_p0), %s165_s6, 128, %s168_s8, %s154_s10  }
  0x22   : > { %p173_p11 = pnand %p368_p1, %p172_p2 }
  0x23   : > { %s665_s22 = sand.u32 (!%p173_p11), 1, %s538_s13  }
  0x24   : > { %176 = sbr.rel (%p173_p11) target bundleno = 189 (0xbd), region = 32  ;;  %s369_s23 = sshll.u32 (!%p173_p11), %s665_s22, 3 }
  0x25   : > { %s179_s28 = scalar_lea.sflag (!%p173_p11), [#allocation3], %s665_s22  ;;  %s182_s29 = scalar_lea.vmem (!%p173_p11), [#allocation2], %s369_s23 }
  0x29   : > { %525 = dma.done.wait (%p626_p8), %s179_s28, 128  }
  0x2a   : > { %527 = vsyncadd (%p626_p8), %s179_s28, 4294967168  ;;  %v557_v0 = vmov 0   ;;  %v236_v1 = vld [vmem:[%s724_s1] sm:$0xf]  ;;  %vm212_vm0 = vcmask 1043456   ;;  %s377_s24 = sshll.u32 %s546_s15, 7 }
  0x2b   : > { %441 = vset.pattern.permute.xlu0 %v557_v0  ;;  %v247_v2 = vld [vmem:[%s725_s2] sm:$0xf]  ;;  %s204_s7 = scalar_lea.vmem [#allocation5], %s369_s23  ;;  %s275_s11 = scalar_lea.hbm %s726_s3, %s377_s24 }
  0x2c   : > { %239 = vperm.xlu0 %441, %v236_v1   ;;  %v207_v3 = vld [vmem:[%s182_s29] sm:$0xff]  ;;  %s277_s8 = sshll.u32 %s204_s7, 4  ;;  %s261_s18 = scalar_lea.sflag [#allocation4], %s665_s22  ;;  %s278_s8 = int_to_ptr.vmem [resolvable:$true] %s277_s8 }
  0x2d   : > { %v208_v4 = vmul.f32 %v207_v3, %v207_v3  ;;  %s474_s19 = scalar_lea.vmem %s278_s8, 128  ;;  %s558_s21 = smov [#allocation5]  }
  0x2e   : > { %p475_p8 = scmp.ne.s32.totalorder %s278_s8, %s474_s19  ;;  %s478_s15 = sshll.u32 %s558_s21, 4  ;;  %s479_s15 = int_to_ptr.vmem [resolvable:$false] %s478_s15 }
  0x2f   : > { %v210_v5 = vcombine.high %v208_v4, %v208_v4  ;;  %v213_v6 = vsel %vm212_vm0, %v208_v4, 0.0  ;;  %s480_s23 = scalar_lea.vmem %s479_s15, 256  ;;  %p481_p0 = scmp.lt.s32.totalorder %s278_s8, %s479_s15 }
  0x30   : > { %250 = vperm.xlu0 %441, %v247_v2   ;;  %v214_v8 = vrot.slane %v213_v6, 4  ;;  %p476_p11 = pnand %p475_p8, %p630_p9  ;;  %p482_p1 = scmp.lt.s32.totalorder %s480_s23, %s474_s19 }
  0x31   : > { %v220_v7 = vsel %vm212_vm0, %v210_v5, 0.0 }
  0x32   : > { %v221_v9 = vrot.slane %v220_v7, 4  ;;  %v215_v10 = vadd.f32 %v214_v8, %v213_v6  ;;  %p477_p12 = pneg %p476_p11  ;;  %p483_p2 = por %p482_p1, %p481_p0 }
  0x34   : > { %v222_v11 = vadd.f32 %v221_v9, %v220_v7  ;;  %v216_v12 = vrot.slane %v215_v10, 2  ;;  %p484_p3 = pnand %p483_p2, %p477_p12 }
  0x36   : > { %v223_v13 = vrot.slane %v222_v11, 2  ;;  %v217_v14 = vadd.f32 %v216_v12, %v215_v10 }
  0x38   : > { %v224_v15 = vadd.f32 %v223_v13, %v222_v11  ;;  %v218_v16 = vrot.slane %v217_v14, 1 }
  0x3a   : > { %v225_v17 = vrot.slane %v224_v15, 1  ;;  %v219_v18 = vadd.f32 %v218_v16, %v217_v14 }
  0x3c   : > { %v226_v19 = vadd.f32 %v225_v17, %v224_v15  ;;  %v227_v20 = vmax.f32 %v219_v18, 1e-24 }
  0x3e   : > { %v228_v21 = vmax.f32 %v226_v19, 1e-24  ;;  %442 = vrsqrt.f32 %v227_v20 }
  0x40   : > { %444 = vrsqrt.f32 %v228_v21 }
  0x4b   : > { %v443_v22 = vpop.eup %442 }
  0x4d   : > { %v445_v23 = vpop.eup %444 }
  0x4e   : > { %v233_v24 = vcombine.low %v443_v22, %v445_v23 }
  0x50   : > { %v235_v25 = vmul.f32 %v233_v24, %v207_v3 }
  0x52   : > { %v243_v26 = vcombine.high %v235_v25, %v235_v25 }
  0xa7   : > { %v240_v27 = vpop.permute.xlu0 %239 }
  0xa8   : > { %v245_v28 = vmul.f32 %v240_v27, %v235_v25  ;;  %v246_v29 = vmul.f32 %v243_v26, %v240_v27 }
  0xab   : > { %v251_v30 = vpop.permute.xlu0 %250 }
  0xac   : > { %v253_v31 = vadd.f32 %v251_v30, %v245_v28  ;;  %v254_v32 = vadd.f32 %v251_v30, %v246_v29 }
  0xae   : > { %v257_v33 = vcombine.low %v253_v31, %v254_v32 }
  0xb0   : > { %259 = vst [vmem:[%s204_s7] sm:$0xff] %v257_v33 }
  0xb1   : > { %487 = shalt.err (!%p484_p3)
}
  0xb2   : > { %s488_s28 = scalar_lea.hbm %s275_s11, 128  ;;  %s492_s30 = scalar_lea.hbm %s726_s3, 256 }
  0xb3   : > { %p489_p5 = scmp.ne.s32.totalorder %s275_s11, %s488_s28  ;;  %p493_p10 = scmp.lt.s32.totalorder %s275_s11, %s726_s3 }
  0xb4   : > { %p494_p4 = scmp.lt.s32.totalorder %s492_s30, %s488_s28 }
  0xb5   : > { %p490_p6 = pnand %p489_p5, %p630_p9 }
  0xb6   : > { %p495_p13 = por %p494_p4, %p493_p10 }
  0xb7   : > { %p491_p7 = pneg %p490_p6 }
  0xb9   : > { %p496_p8 = pnand %p495_p13, %p491_p7 }
  0xbb   : > { %499 = shalt.err (!%p496_p8)
}
  0xbc   : > { %380 = dma.vmem_to_hbm [thread:$0]  (%p630_p9), %s278_s8, 128, %s275_s11, %s261_s18  }
  0xbd PF: > { %s289_s6 = sand.u32 1, %s534_s12   ;;  %p732_p11 = scmp.ne.s32.totalorder %s730_s27, 0 }
  0xbe   : > { %p733_p12 = scmp.ge.s32.totalorder %s554_s17, 2  ;;  %s290_s24 = scalar_lea.sflag [#allocation4], %s289_s6 }
  0xc0   : > { %p387_p0 = pnand %p733_p12, %p732_p11 }
  0xc2   : > { %p388_p1 = pneg %p387_p0 }
  0xc4   : > { %529 = dma.done.wait (%p388_p1), %s290_s24, 128  }
  0xc5   : > { %531 = vsyncadd (%p388_p1), %s290_s24, 4294967168  ;;  %s19_s17 = sadd.s32 1, %s554_s17   ;;  %s734_s12 = smov %s538_s13 }
  0xc6   : > { %p16_p2 = scmp.ge.s32.totalorder %s19_s17, 4   ;;  %s735_s13 = smov %s542_s14 }
  0xc7   : > { %s736_s14 = smov %s635_s26  ;;  %s737_s15 = smov %s550_s16 }
  0xc8   : > { %s738_s16 = smov %s740_s20  ;;  %18 = sbr.rel (!%p16_p2) target bundleno = 6 (0x6), region = 77 }
  0xcd   :  { %295 = vsyncpa [#allocation3], 1 }
  0xce   :  { %297 = vsyncpa [#allocation3 + $0x1], 1 }
  0xcf   :  { %298 = vsyncpa [#allocation4], 1 }
  0xd0   :  { %300 = vsyncpa [#allocation4 + $0x1], 1 }

</bundles_post_ra>
